<compile_context>
chip_gen: v6e
topology: v6e:2x2x1
jax: 0.10.0
libtpu: 0.0.40
codegen_flags: <defaults>
</compile_context>

<pallas_src>
import functools

import jax
import jax.numpy as jnp
from jax.experimental import pallas as pl
from jax.experimental.pallas import tpu as pltpu

_LANES = 128
_GROUP = 64                              # rows in the small accumulator (8 vregs)
_TARGET_BLOCK_BYTES = 2 * 1024 * 1024    # ~2 MiB of HBM per input block
_MAX_BLOCK_ROWS = 8192
_SMALL_N_FALLBACK = 1024                 # below this, plain jnp is strictly faster


def _round_up(x, m):
    return ((x + m - 1) // m) * m


def _num_tensorcores():
    """Best-effort TensorCore count (2 on v7x, 1 on v5e/v6e). Defaults to 1."""
    try:
        info = pltpu.get_tpu_info()
    except Exception:
        return 1
    for attr in ("num_cores", "num_tensorcores", "tensorcores_per_chip",
                 "cores_per_chip"):
        v = getattr(info, attr, None)
        if isinstance(v, int) and v >= 1:
            return v
    return 1


def _make_kernel(block_rows, group, rows, steps, any_mask):
    """Builds the SIMSE partial-sum kernel specialized to static sizes.

    Streams (block_rows, 128) tiles of pred/real, folds diff and diff^2 into a
    small (group, 128) f32 accumulator, and emits one (group, 128) partial per
    grid split on the last sequential step.  The cheap final scalar reduction
    happens in the JAX wrapper.
    """
    folds = block_rows // group

    def kernel(pred_ref, real_ref, out_sum_ref, out_sq_ref, acc_sum, acc_sq):
        c = pl.program_id(0)     # split axis ("parallel")
        i = pl.program_id(1)     # sequential reduction axis ("arbitrary")
        blk = c * steps + i      # unclamped logical block index

        @pl.when(i == 0)
        def _init():
            acc_sum[...] = jnp.zeros((group, _LANES), jnp.float32)
            acc_sq[...] = jnp.zeros((group, _LANES), jnp.float32)

        def fold_block(apply_mask):
            base = blk * block_rows

            def chunk(k):
                r = real_ref[group * k:group * (k + 1), :].astype(jnp.float32)
                p = pred_ref[group * k:group * (k + 1), :].astype(jnp.float32)
                dv = r - p
                if apply_mask:
                    # Mask dv *before* dv*dv so padded / phantom rows (which
                    # may hold garbage bits) contribute exactly zero.
                    row = jax.lax.broadcasted_iota(jnp.int32, (group, _LANES), 0)
                    dv = jnp.where(base + group * k + row < rows, dv, 0.0)
                return dv

            d0 = chunk(0)
            p_sum = d0
            p_sq = d0 * d0
            for k in range(1, folds):
                dk = chunk(k)
                p_sum = p_sum + dk
                p_sq = p_sq + dk * dk
            acc_sum[...] = acc_sum[...] + p_sum
            acc_sq[...] = acc_sq[...] + p_sq

        if any_mask:
            # At most the partial tail block and clamped phantom blocks need
            # masking -> keep the iota/compare/where out of the common path.
            block_is_partial = (blk + 1) * block_rows > rows

            @pl.when(block_is_partial)
            def _masked():
                fold_block(True)

            @pl.when(jnp.logical_not(block_is_partial))
            def _unmasked():
                fold_block(False)
        else:
            fold_block(False)

        @pl.when(i == steps - 1)
        def _finalize():
            out_sum_ref[...] = acc_sum[...]
            out_sq_ref[...] = acc_sq[...]

    return kernel


@functools.partial(
    jax.jit, static_argnames=("block_bytes", "num_splits", "small_n_threshold"))
def simse_loss(pred, real, *, block_bytes=_TARGET_BLOCK_BYTES, num_splits=None,
               small_n_threshold=_SMALL_N_FALLBACK):
    """SIMSE loss = mean(diff^2) - (sum(diff))^2 / n^2, diff = real - pred."""
    assert pred.shape == real.shape, "pred/real must have identical shapes"
    n = pred.size  # static element count

    if n < small_n_threshold:
        # Small-n fallback: pallas_call fixed cost dwarfs the actual work.
        d = real.astype(jnp.float32) - pred.astype(jnp.float32)
        inv_n = 1.0 / float(n)
        return jnp.sum(d * d) * inv_n - (jnp.sum(d) * inv_n) ** 2

    pred_f = pred.reshape(-1)
    real_f = real.reshape(-1)

    # Minimal lane padding, only when n is not a multiple of 128 (padded
    # positions yield diff == 0, so they do not perturb the sums).
    if n % _LANES:
        pad = _LANES - n % _LANES
        pred_f = jnp.pad(pred_f, (0, pad))
        real_f = jnp.pad(real_f, (0, pad))
    rows = (n + _LANES - 1) // _LANES
    pred2 = pred_f.reshape(rows, _LANES)
    real2 = real_f.reshape(rows, _LANES)

    # Dtype-aware row-block sizing: ~block_bytes of HBM per input block,
    # aligned to the small-accumulator group size (and sublane tiling).
    itemsize = int(jnp.dtype(pred.dtype).itemsize)
    row_align = max(8, 32 // itemsize)               # 8 f32 / 16 bf16 / 32 int8
    if rows <= _GROUP:
        block_rows = _round_up(rows, row_align)
        group = block_rows
    else:
        target_rows = max(_GROUP, block_bytes // (_LANES * itemsize))
        target_rows = min(_MAX_BLOCK_ROWS, _round_up(target_rows, _GROUP))
        block_rows = min(target_rows, _round_up(rows, _GROUP))
        group = _GROUP

    num_blocks = pl.cdiv(rows, block_rows)
    if num_splits is None:
        num_splits = _num_tensorcores()              # 1 on v5e/v6e, 2 on v7x
    num_splits = max(1, min(int(num_splits), num_blocks))
    steps = pl.cdiv(num_blocks, num_splits)
    covered_blocks = num_splits * steps
    needs_clamp = covered_blocks > num_blocks        # phantom blocks exist
    any_mask = covered_blocks * block_rows != rows   # partial/phantom rows exist

    if needs_clamp:
        def in_index(c, i):
            return (jnp.minimum(c * steps + i, num_blocks - 1), 0)
    else:
        def in_index(c, i):
            return (c * steps + i, 0)

    kernel = _make_kernel(block_rows, group, rows, steps, any_mask)

    part_sum, part_sq = pl.pallas_call(
        kernel,
        out_shape=(
            jax.ShapeDtypeStruct((num_splits, group, _LANES), jnp.float32),
            jax.ShapeDtypeStruct((num_splits, group, _LANES), jnp.float32),
        ),
        grid_spec=pltpu.PrefetchScalarGridSpec(
            num_scalar_prefetch=0,
            grid=(num_splits, steps),
            in_specs=[
                pl.BlockSpec((block_rows, _LANES), in_index),
                pl.BlockSpec((block_rows, _LANES), in_index),
            ],
            out_specs=(
                pl.BlockSpec((None, group, _LANES), lambda c, i: (c, 0, 0)),
                pl.BlockSpec((None, group, _LANES), lambda c, i: (c, 0, 0)),
            ),
            scratch_shapes=[
                pltpu.VMEM((group, _LANES), jnp.float32),
                pltpu.VMEM((group, _LANES), jnp.float32),
            ],
        ),
        # TODO(synk): on v7x, verify in a profile that the split axis lands on
        # both TensorCores; if not, switch to CORE_PARALLEL semantics.
        compiler_params=pltpu.CompilerParams(
            dimension_semantics=("parallel", "arbitrary"),
        ),
    )(pred2, real2)

    s = jnp.sum(part_sum)    # sum(diff)
    s2 = jnp.sum(part_sq)    # sum(diff^2)
    inv_n = 1.0 / float(n)   # n is static
    mse = s2 * inv_n
    simse = (s * inv_n) ** 2
    return mse - simse


def simse_loss_ref(pred, real):
    d = real.astype(jnp.float32) - pred.astype(jnp.float32)
    n = d.size
    return jnp.sum(d * d) / n - (jnp.sum(d) / n) ** 2


if __name__ == "__main__":
    # Primary example: small NCHW tensor as SIMSELoss sees on conv outputs.
    kp, kr = jax.random.split(jax.random.PRNGKey(0))
    pred = jax.random.normal(kp, (2, 4, 16, 16), dtype=jnp.float32)
    real = jax.random.normal(kr, (2, 4, 16, 16), dtype=jnp.float32)
    out = jax.block_until_ready(simse_loss(pred, real))
    ref = simse_loss_ref(pred, real)
    assert jnp.allclose(out, ref, rtol=1e-5, atol=1e-5), (out, ref)

    # Extra structural coverage: unaligned lane tail, multi-block even 2-way
    # split, clamped phantom block + mask, bf16 input, small-n jnp fallback.
    cases = [
        ((3, 5, 17, 13), jnp.float32, dict()),                                 # pad + mask
        ((2, 8, 32, 32), jnp.float32, dict(block_bytes=32768, num_splits=2)),  # even split
        ((2, 12, 32, 32), jnp.float32, dict(block_bytes=32768, num_splits=2)), # clamp + mask
        ((2, 4, 16, 16), jnp.bfloat16, dict()),                                # bf16 upcast
        ((2, 3, 4, 4), jnp.float32, dict()),                                   # jnp fallback
    ]
    for idx, (shape, dtype, kwargs) in enumerate(cases, start=1):
        kp, kr = jax.random.split(jax.random.PRNGKey(idx))
        p = jax.random.normal(kp, shape, dtype=jnp.float32).astype(dtype)
        r = jax.random.normal(kr, shape, dtype=jnp.float32).astype(dtype)
        o = jax.block_until_ready(simse_loss(p, r, **kwargs))
        rf = simse_loss_ref(p, r)
        assert jnp.allclose(o, rf, rtol=1e-4, atol=1e-4), (shape, dtype, o, rf)

    print("KERNEL_OK")
</pallas_src>

<mosaic_0001>
module attributes {stable_mosaic.version = 11 : i64} {
  func.func @kernel(%arg0: i32, %arg1: i32, %arg2: memref<16x128xf32, #tpu.memory_space<vmem>>, %arg3: memref<16x128xf32, #tpu.memory_space<vmem>>, %arg4: memref<1x16x128xf32, #tpu.memory_space<vmem>>, %arg5: memref<1x16x128xf32, #tpu.memory_space<vmem>>, %arg6: memref<16x128xf32, #tpu.memory_space<vmem>>, %arg7: memref<16x128xf32, #tpu.memory_space<vmem>>) attributes {dimension_semantics = [#tpu.dimension_semantics<parallel>, #tpu.dimension_semantics<arbitrary>], iteration_bounds = array<i64: 1, 1>, scalar_prefetch = 0 : i64, scratch_operands = 2 : i64, tpu.core_type = #tpu.core_type<tc>, window_params = [{transform_indices = @transform_0, window_bounds = array<i64: 16, 128>}, {transform_indices = @transform_1, window_bounds = array<i64: 16, 128>}, {transform_indices = @transform_2, window_bounds = array<i64: 1, 16, 128>}, {transform_indices = @transform_3, window_bounds = array<i64: 1, 16, 128>}]} {
    %c0_i32 = arith.constant 0 : i32
    %0 = arith.cmpi eq, %arg1, %c0_i32 : i32
    %1 = arith.extui %0 : i1 to i32
    %c0_i32_0 = arith.constant 0 : i32
    %2 = arith.cmpi ne, %1, %c0_i32_0 : i32
    scf.if %2 {
      %cst = arith.constant 0.000000e+00 : f32
      %16 = vector.broadcast %cst : f32 to vector<16x128xf32>
      %c0_14 = arith.constant 0 : index
      %c0_15 = arith.constant 0 : index
      %17 = vector.load %arg6[%c0_14, %c0_15] : memref<16x128xf32, #tpu.memory_space<vmem>>, vector<16x128xf32>
      tpu.vector_store %arg6[%c0_14, %c0_15], %16 {strides = array<i32>} : memref<16x128xf32, #tpu.memory_space<vmem>>, vector<16x128xf32>,
      %cst_16 = arith.constant 0.000000e+00 : f32
      %18 = vector.broadcast %cst_16 : f32 to vector<16x128xf32>
      %c0_17 = arith.constant 0 : index
      %c0_18 = arith.constant 0 : index
      %19 = vector.load %arg7[%c0_17, %c0_18] : memref<16x128xf32, #tpu.memory_space<vmem>>, vector<16x128xf32>
      tpu.vector_store %arg7[%c0_17, %c0_18], %18 {strides = array<i32>} : memref<16x128xf32, #tpu.memory_space<vmem>>, vector<16x128xf32>,
    } else {
    }
    %c0 = arith.constant 0 : index
    %c0_1 = arith.constant 0 : index
    %3 = vector.load %arg3[%c0, %c0_1] : memref<16x128xf32, #tpu.memory_space<vmem>>, vector<16x128xf32>
    %c0_2 = arith.constant 0 : index
    %c0_3 = arith.constant 0 : index
    %4 = vector.load %arg2[%c0_2, %c0_3] : memref<16x128xf32, #tpu.memory_space<vmem>>, vector<16x128xf32>
    %5 = arith.subf %3, %4 : vector<16x128xf32>
    %6 = arith.mulf %5, %5 : vector<16x128xf32>
    %c0_4 = arith.constant 0 : index
    %c0_5 = arith.constant 0 : index
    %7 = vector.load %arg6[%c0_4, %c0_5] : memref<16x128xf32, #tpu.memory_space<vmem>>, vector<16x128xf32>
    %8 = arith.addf %7, %5 : vector<16x128xf32>
    %c0_6 = arith.constant 0 : index
    %c0_7 = arith.constant 0 : index
    %9 = vector.load %arg6[%c0_6, %c0_7] : memref<16x128xf32, #tpu.memory_space<vmem>>, vector<16x128xf32>
    tpu.vector_store %arg6[%c0_6, %c0_7], %8 {strides = array<i32>} : memref<16x128xf32, #tpu.memory_space<vmem>>, vector<16x128xf32>,
    %c0_8 = arith.constant 0 : index
    %c0_9 = arith.constant 0 : index
    %10 = vector.load %arg7[%c0_8, %c0_9] : memref<16x128xf32, #tpu.memory_space<vmem>>, vector<16x128xf32>
    %11 = arith.addf %10, %6 : vector<16x128xf32>
    %c0_10 = arith.constant 0 : index
    %c0_11 = arith.constant 0 : index
    %12 = vector.load %arg7[%c0_10, %c0_11] : memref<16x128xf32, #tpu.memory_space<vmem>>, vector<16x128xf32>
    tpu.vector_store %arg7[%c0_10, %c0_11], %11 {strides = array<i32>} : memref<16x128xf32, #tpu.memory_space<vmem>>, vector<16x128xf32>,
    %c0_i32_12 = arith.constant 0 : i32
    %13 = arith.cmpi eq, %arg1, %c0_i32_12 : i32
    %14 = arith.extui %13 : i1 to i32
    %c0_i32_13 = arith.constant 0 : i32
    %15 = arith.cmpi ne, %14, %c0_i32_13 : i32
    scf.if %15 {
      %c0_14 = arith.constant 0 : index
      %c0_15 = arith.constant 0 : index
      %16 = vector.load %arg6[%c0_14, %c0_15] : memref<16x128xf32, #tpu.memory_space<vmem>>, vector<16x128xf32>
      %c0_16 = arith.constant 0 : index
      %c0_17 = arith.constant 0 : index
      %c0_18 = arith.constant 0 : index
      %17 = vector.load %arg4[%c0_16, %c0_17, %c0_18] : memref<1x16x128xf32, #tpu.memory_space<vmem>>, vector<1x16x128xf32>
      %18 = vector.shape_cast %17 : vector<1x16x128xf32> to vector<16x128xf32>
      %19 = vector.shape_cast %16 : vector<16x128xf32> to vector<1x16x128xf32>
      tpu.vector_store %arg4[%c0_16, %c0_17, %c0_18], %19 {strides = array<i32>} : memref<1x16x128xf32, #tpu.memory_space<vmem>>, vector<1x16x128xf32>,
      %c0_19 = arith.constant 0 : index
      %c0_20 = arith.constant 0 : index
      %20 = vector.load %arg7[%c0_19, %c0_20] : memref<16x128xf32, #tpu.memory_space<vmem>>, vector<16x128xf32>
      %c0_21 = arith.constant 0 : index
      %c0_22 = arith.constant 0 : index
      %c0_23 = arith.constant 0 : index
      %21 = vector.load %arg5[%c0_21, %c0_22, %c0_23] : memref<1x16x128xf32, #tpu.memory_space<vmem>>, vector<1x16x128xf32>
      %22 = vector.shape_cast %21 : vector<1x16x128xf32> to vector<16x128xf32>
      %23 = vector.shape_cast %20 : vector<16x128xf32> to vector<1x16x128xf32>
      tpu.vector_store %arg5[%c0_21, %c0_22, %c0_23], %23 {strides = array<i32>} : memref<1x16x128xf32, #tpu.memory_space<vmem>>, vector<1x16x128xf32>,
    } else {
    }
    return
  }
  func.func @transform_0(%arg0: i32, %arg1: i32) -> (i32, i32) {
    %c1_i32 = arith.constant 1 : i32
    %0 = arith.muli %arg0, %c1_i32 : i32
    %1 = arith.addi %0, %arg1 : i32
    %c0_i32 = arith.constant 0 : i32
    %c0_i32_0 = arith.constant 0 : i32
    return %1, %c0_i32 : i32, i32
  }
  func.func @transform_1(%arg0: i32, %arg1: i32) -> (i32, i32) {
    %c1_i32 = arith.constant 1 : i32
    %0 = arith.muli %arg0, %c1_i32 : i32
    %1 = arith.addi %0, %arg1 : i32
    %c0_i32 = arith.constant 0 : i32
    %c0_i32_0 = arith.constant 0 : i32
    return %1, %c0_i32 : i32, i32
  }
  func.func @transform_2(%arg0: i32, %arg1: i32) -> (i32, i32, i32) {
    %c0_i32 = arith.constant 0 : i32
    %c0_i32_0 = arith.constant 0 : i32
    %c0_i32_1 = arith.constant 0 : i32
    return %arg0, %c0_i32, %c0_i32_0 : i32, i32, i32
  }
  func.func @transform_3(%arg0: i32, %arg1: i32) -> (i32, i32, i32) {
    %c0_i32 = arith.constant 0 : i32
    %c0_i32_0 = arith.constant 0 : i32
    %c0_i32_1 = arith.constant 0 : i32
    return %arg0, %c0_i32, %c0_i32_0 : i32, i32, i32
  }
}

</mosaic_0001>

<bundles_post_ra>
// kernel: simse_loss.1
= control target key start
LH: loop header
LB: loop body
LE: loop exit
PB: predicated region body
PF: predicated region fallthrough
CT: control target
= control target key end

     0   :  { %s160_s0 = inlined_call_operand.vmem [shape: f32[16,128], index: 0, kind: input, shape index: {}]   ;;  %s161_s1 = inlined_call_operand.vmem [shape: f32[16,128], index: 1, kind: input, shape index: {}]   ;;  %s162_s2 = inlined_call_operand.vmem [shape: f32[1,16,128], index: 2, kind: output, shape index: {0}]   ;;  %s163_s3 = inlined_call_operand.vmem [shape: f32[1,16,128], index: 3, kind: output, shape index: {1}]  }
   0x1   :  { %v65_v0 = vld [vmem:[%s161_s1] sm:$0xff]  ;;  %v66_v2 = vld [vmem:[%s161_s1 + $0x8] sm:$0xff] }
   0x2   :  { %v67_v1 = vld [vmem:[%s160_s0] sm:$0xff]  ;;  %v68_v4 = vld [vmem:[%s160_s0 + $0x8] sm:$0xff] }
   0x3   :  { %v69_v3 = vsub.f32 %v65_v0, %v67_v1  ;;  %v70_v5 = vsub.f32 %v66_v2, %v68_v4 }
   0x5   :  { %90 = vst [vmem:[%s162_s2] sm:$0xff] %v69_v3  ;;  %v71_v6 = vmul.f32 %v69_v3, %v69_v3  ;;  %91 = vst [vmem:[%s162_s2 + $0x8] sm:$0xff] %v70_v5  ;;  %v72_v7 = vmul.f32 %v70_v5, %v70_v5 }
   0x7   :  { %94 = vst [vmem:[%s163_s3] sm:$0xff] %v71_v6  ;;  %95 = vst [vmem:[%s163_s3 + $0x8] sm:$0xff] %v72_v7 }

</bundles_post_ra>
